<compile_context>
chip_gen: v7x
topology: tpu7x:2x2x1
jax: 0.10.0
libtpu: 0.0.40
codegen_flags: <defaults>
</compile_context>

<pallas_src>
import functools

import jax
import jax.numpy as jnp
from jax.experimental import pallas as pl
from jax.experimental.pallas import tpu as pltpu


def _round_up(x, m):
    return (x + m - 1) // m * m


# ----------------------------- Pallas kernel --------------------------------
def _quad_conv_kernel(cp, k2, img_w, hwp, lc,
                      x_ref, w_ref, b_ref, o_ref, rhs_ref):
    """One grid step = one image.

    x_ref  : (1, Cin, Lin)   flat image row, zero-padded on the lane axis
    w_ref  : (3*cp, 2*k2)    fused weights [wr|0 ; wg|0 ; 0|wb] (grid-invariant)
    b_ref  : (3*cp, 1)       f32 biases    [br   ; bg   ; bb  ] (grid-invariant)
    o_ref  : (1, cp, hwp)    lane-dense flat output for this image (f32)
    rhs_ref: (2*k2, lc)      f32 VMEM scratch: [taps ; taps**2] of current chunk
    """
    cin = x_ref.shape[1]
    w = w_ref[...]
    bias = b_ref[...]
    for c in range(hwp // lc):                       # static lane-chunk loop
        base = c * lc
        # ---- in-kernel im2col: 9 shifted windows of the flat image --------
        for k in range(9):
            kh, kw = divmod(k, 3)
            tap = x_ref[0, :, pl.ds(base + kh * img_w + kw, lc)]
            tap = tap.astype(jnp.float32)            # (Cin, lc)
            rhs_ref[k * cin:(k + 1) * cin, :] = tap
            rhs_ref[k2 + k * cin:k2 + (k + 1) * cin, :] = tap * tap
        # ---- single fused MXU matmul over [p ; p**2], f32 accumulate -------
        rhs = rhs_ref[...].astype(w.dtype)
        s = jnp.dot(w, rhs, preferred_element_type=jnp.float32) + bias
        r = s[0 * cp:1 * cp]
        g = s[1 * cp:2 * cp]
        b = s[2 * cp:3 * cp]
        o_ref[0, :, pl.ds(base, lc)] = jnp.maximum(r * g + b, 0.0)


# ------------------------------ host wrapper ---------------------------------
@functools.partial(jax.jit, static_argnames=("compute_dtype", "lane_chunk"))
def quad_conv_forward(x, params, compute_dtype=jnp.float32, lane_chunk=4096):
    """x: (N, Cin, H, W) f32 NCHW -> (N, Cout, H-2, W-2) f32 (valid, stride 1)."""
    wr, wg, wb, br, bg, bb = params
    N, Cin, H, W = x.shape
    OH, OW = H - 2, W - 2
    Cout = wr.shape[0]
    K2 = Cin * 9
    cp = _round_up(Cout, 8)        # f32 output -> 8-sublane tile (use 16 for bf16 out)
    CF = 3 * cp
    HW = H * W
    LC = min(lane_chunk, _round_up(HW, 128))   # lane chunk (multiple of 128)
    HWp = _round_up(HW, LC)                    # lane-dense, grid/chunk divisible
    Lin = HWp + _round_up(2 * W + 2, 128)      # room for the largest tap shift

    # Flat, zero-padded image rows (the ONLY patch data that hits HBM).
    x_flat = x.reshape(N, Cin, HW).astype(compute_dtype)
    x_flat = jnp.pad(x_flat, ((0, 0), (0, 0), (0, Lin - HW)))

    # Fused weights (CF, 2*K2): rows [wr|0 ; wg|0 ; 0|wb], tap-major columns
    # (k = kh*3 + kw, then cin) to match the in-kernel rhs row order.
    def pack(wc):                                  # (Cout,Cin,3,3) -> (Cout, 9*Cin)
        return wc.transpose(0, 2, 3, 1).reshape(Cout, K2)

    w_f = jnp.zeros((CF, 2 * K2), jnp.float32)
    w_f = w_f.at[0:Cout, 0:K2].set(pack(wr))
    w_f = w_f.at[cp:cp + Cout, 0:K2].set(pack(wg))
    w_f = w_f.at[2 * cp:2 * cp + Cout, K2:2 * K2].set(pack(wb))
    w_f = w_f.astype(compute_dtype)

    b_f = jnp.zeros((CF, 1), jnp.float32)
    b_f = (b_f.at[0:Cout, 0].set(br)
              .at[cp:cp + Cout, 0].set(bg)
              .at[2 * cp:2 * cp + Cout, 0].set(bb))

    cost = pl.CostEstimate(
        flops=int(2 * N * CF * (2 * K2) * HWp + 4 * N * cp * HWp),
        transcendentals=0,
        bytes_accessed=int(x_flat.size * x_flat.dtype.itemsize
                           + w_f.size * w_f.dtype.itemsize
                           + N * cp * HWp * 4))

    out = pl.pallas_call(
        functools.partial(_quad_conv_kernel, cp, K2, W, HWp, LC),
        out_shape=jax.ShapeDtypeStruct((N, cp, HWp), jnp.float32),
        grid_spec=pltpu.PrefetchScalarGridSpec(
            num_scalar_prefetch=0,
            grid=(N,),
            in_specs=[pl.BlockSpec((1, Cin, Lin), lambda n: (n, 0, 0)),
                      pl.BlockSpec((CF, 2 * K2), lambda n: (0, 0)),
                      pl.BlockSpec((CF, 1), lambda n: (0, 0))],
            out_specs=pl.BlockSpec((1, cp, HWp), lambda n: (n, 0, 0)),
            scratch_shapes=[pltpu.VMEM((2 * K2, LC), jnp.float32)]),
        compiler_params=pltpu.CompilerParams(
            dimension_semantics=("parallel",)),
        cost_estimate=cost,
    )(x_flat, w_f, b_f)

    # N-major output: just drop padding and reshape -- NO transpose.
    out = out[:, :Cout, :HW].reshape(N, Cout, H, W)[:, :, :OH, :OW]
    return out


# ---------------------- pure-JAX reference & params --------------------------
def quad_conv_reference(x, params):
    wr, wg, wb, br, bg, bb = params
    dn = jax.lax.conv_dimension_numbers(x.shape, wr.shape,
                                        ("NCHW", "OIHW", "NCHW"))

    def conv(inp, w, b):
        y = jax.lax.conv_general_dilated(inp, w, (1, 1), "VALID",
                                         dimension_numbers=dn)
        return y + b.reshape(1, -1, 1, 1)

    out = conv(x, wr, br) * conv(x, wg, bg) + conv(x * x, wb, bb)
    return jnp.maximum(out, 0.0)


def init_params(key, in_channels=1, out_channels=15):
    kr, kg, kb = jax.random.split(key, 3)
    wshape = (out_channels, in_channels, 3, 3)
    # conv_r: truncated normal (mean 0, std 0.1); conv_g / conv_b: default-style
    # normals; all biases -0.02, matching the PyTorch module's init intent.
    wr = 0.1 * jax.random.truncated_normal(kr, -2.0, 2.0, wshape, jnp.float32)
    wg = 0.1 * jax.random.normal(kg, wshape, jnp.float32)
    wb = 0.1 * jax.random.normal(kb, wshape, jnp.float32)
    br = jnp.full((out_channels,), -0.02, jnp.float32)
    bg = jnp.full((out_channels,), -0.02, jnp.float32)
    bb = jnp.full((out_channels,), -0.02, jnp.float32)
    return (wr, wg, wb, br, bg, bb)


if __name__ == "__main__":
    key = jax.random.PRNGKey(0)
    kx, kp = jax.random.split(key)
    # in_channels=1 per module default; batch=2, spatial 16x16 -> output 14x14
    x = jax.random.normal(kx, (2, 1, 16, 16), jnp.float32)
    params = init_params(kp)

    ref = quad_conv_reference(x, params)

    # f32 path: strict check.
    out = quad_conv_forward(x, params)
    out = jax.block_until_ready(out)
    assert out.shape == ref.shape == (2, 15, 14, 14)
    assert jnp.allclose(out, ref, atol=1e-4, rtol=1e-4)

    # bf16 patch/weight stream (f32 accumulate + epilogue): loose check.
    out_bf16 = quad_conv_forward(x, params, compute_dtype=jnp.bfloat16)
    out_bf16 = jax.block_until_ready(out_bf16)
    assert jnp.allclose(out_bf16, ref, atol=2e-2, rtol=5e-2)

    print("KERNEL_OK")
</pallas_src>

<mosaic_0001>
module attributes {stable_mosaic.version = 11 : i64} {
  func.func @_quad_conv_kernel(%arg0: i32, %arg1: memref<1x1x384xf32, #tpu.memory_space<vmem>>, %arg2: memref<48x18xf32, #tpu.memory_space<vmem>>, %arg3: memref<48x1xf32, #tpu.memory_space<vmem>>, %arg4: memref<1x16x256xf32, #tpu.memory_space<vmem>>, %arg5: memref<18x256xf32, #tpu.memory_space<vmem>>) attributes {dimension_semantics = [#tpu.dimension_semantics<parallel>], iteration_bounds = array<i64: 2>, scalar_prefetch = 0 : i64, scratch_operands = 1 : i64, tpu.core_type = #tpu.core_type<tc>, window_params = [{transform_indices = @transform_0, window_bounds = array<i64: 1, 1, 384>}, {pipeline_mode = #tpu.pipeline_mode<synchronous>, transform_indices = @transform_1, window_bounds = array<i64: 48, 18>}, {pipeline_mode = #tpu.pipeline_mode<synchronous>, transform_indices = @transform_2, window_bounds = array<i64: 48, 1>}, {transform_indices = @transform_3, window_bounds = array<i64: 1, 16, 256>}]} {
    %c0 = arith.constant 0 : index
    %c0_0 = arith.constant 0 : index
    %0 = vector.load %arg2[%c0, %c0_0] : memref<48x18xf32, #tpu.memory_space<vmem>>, vector<48x18xf32>
    %c0_1 = arith.constant 0 : index
    %c0_2 = arith.constant 0 : index
    %1 = vector.load %arg3[%c0_1, %c0_2] : memref<48x1xf32, #tpu.memory_space<vmem>>, vector<48x1xf32>
    %c0_3 = arith.constant 0 : index
    %c0_4 = arith.constant 0 : index
    %c0_5 = arith.constant 0 : index
    %2 = vector.load %arg1[%c0_3, %c0_4, %c0_5] : memref<1x1x384xf32, #tpu.memory_space<vmem>>, vector<1x1x256xf32>
    %3 = vector.shape_cast %2 : vector<1x1x256xf32> to vector<1x256xf32>
    %c0_6 = arith.constant 0 : index
    %c0_7 = arith.constant 0 : index
    %4 = vector.load %arg5[%c0_6, %c0_7] : memref<18x256xf32, #tpu.memory_space<vmem>>, vector<1x256xf32>
    tpu.vector_store %arg5[%c0_6, %c0_7], %3 {strides = array<i32>} : memref<18x256xf32, #tpu.memory_space<vmem>>, vector<1x256xf32>,
    %5 = arith.mulf %3, %3 : vector<1x256xf32>
    %c9 = arith.constant 9 : index
    %c0_8 = arith.constant 0 : index
    %6 = vector.load %arg5[%c9, %c0_8] : memref<18x256xf32, #tpu.memory_space<vmem>>, vector<1x256xf32>
    tpu.vector_store %arg5[%c9, %c0_8], %5 {strides = array<i32>} : memref<18x256xf32, #tpu.memory_space<vmem>>, vector<1x256xf32>,
    %c0_9 = arith.constant 0 : index
    %c0_10 = arith.constant 0 : index
    %c1 = arith.constant 1 : index
    %7 = vector.load %arg1[%c0_9, %c0_10, %c1] : memref<1x1x384xf32, #tpu.memory_space<vmem>>, vector<1x1x256xf32>
    %8 = vector.shape_cast %7 : vector<1x1x256xf32> to vector<1x256xf32>
    %c1_11 = arith.constant 1 : index
    %c0_12 = arith.constant 0 : index
    %9 = vector.load %arg5[%c1_11, %c0_12] : memref<18x256xf32, #tpu.memory_space<vmem>>, vector<1x256xf32>
    tpu.vector_store %arg5[%c1_11, %c0_12], %8 {strides = array<i32>} : memref<18x256xf32, #tpu.memory_space<vmem>>, vector<1x256xf32>,
    %10 = arith.mulf %8, %8 : vector<1x256xf32>
    %c10 = arith.constant 10 : index
    %c0_13 = arith.constant 0 : index
    %11 = vector.load %arg5[%c10, %c0_13] : memref<18x256xf32, #tpu.memory_space<vmem>>, vector<1x256xf32>
    tpu.vector_store %arg5[%c10, %c0_13], %10 {strides = array<i32>} : memref<18x256xf32, #tpu.memory_space<vmem>>, vector<1x256xf32>,
    %c0_14 = arith.constant 0 : index
    %c0_15 = arith.constant 0 : index
    %c2 = arith.constant 2 : index
    %12 = vector.load %arg1[%c0_14, %c0_15, %c2] : memref<1x1x384xf32, #tpu.memory_space<vmem>>, vector<1x1x256xf32>
    %13 = vector.shape_cast %12 : vector<1x1x256xf32> to vector<1x256xf32>
    %c2_16 = arith.constant 2 : index
    %c0_17 = arith.constant 0 : index
    %14 = vector.load %arg5[%c2_16, %c0_17] : memref<18x256xf32, #tpu.memory_space<vmem>>, vector<1x256xf32>
    tpu.vector_store %arg5[%c2_16, %c0_17], %13 {strides = array<i32>} : memref<18x256xf32, #tpu.memory_space<vmem>>, vector<1x256xf32>,
    %15 = arith.mulf %13, %13 : vector<1x256xf32>
    %c11 = arith.constant 11 : index
    %c0_18 = arith.constant 0 : index
    %16 = vector.load %arg5[%c11, %c0_18] : memref<18x256xf32, #tpu.memory_space<vmem>>, vector<1x256xf32>
    tpu.vector_store %arg5[%c11, %c0_18], %15 {strides = array<i32>} : memref<18x256xf32, #tpu.memory_space<vmem>>, vector<1x256xf32>,
    %c0_19 = arith.constant 0 : index
    %c0_20 = arith.constant 0 : index
    %c16 = arith.constant 16 : index
    %17 = vector.load %arg1[%c0_19, %c0_20, %c16] : memref<1x1x384xf32, #tpu.memory_space<vmem>>, vector<1x1x256xf32>
    %18 = vector.shape_cast %17 : vector<1x1x256xf32> to vector<1x256xf32>
    %c3 = arith.constant 3 : index
    %c0_21 = arith.constant 0 : index
    %19 = vector.load %arg5[%c3, %c0_21] : memref<18x256xf32, #tpu.memory_space<vmem>>, vector<1x256xf32>
    tpu.vector_store %arg5[%c3, %c0_21], %18 {strides = array<i32>} : memref<18x256xf32, #tpu.memory_space<vmem>>, vector<1x256xf32>,
    %20 = arith.mulf %18, %18 : vector<1x256xf32>
    %c12 = arith.constant 12 : index
    %c0_22 = arith.constant 0 : index
    %21 = vector.load %arg5[%c12, %c0_22] : memref<18x256xf32, #tpu.memory_space<vmem>>, vector<1x256xf32>
    tpu.vector_store %arg5[%c12, %c0_22], %20 {strides = array<i32>} : memref<18x256xf32, #tpu.memory_space<vmem>>, vector<1x256xf32>,
    %c0_23 = arith.constant 0 : index
    %c0_24 = arith.constant 0 : index
    %c17 = arith.constant 17 : index
    %22 = vector.load %arg1[%c0_23, %c0_24, %c17] : memref<1x1x384xf32, #tpu.memory_space<vmem>>, vector<1x1x256xf32>
    %23 = vector.shape_cast %22 : vector<1x1x256xf32> to vector<1x256xf32>
    %c4 = arith.constant 4 : index
    %c0_25 = arith.constant 0 : index
    %24 = vector.load %arg5[%c4, %c0_25] : memref<18x256xf32, #tpu.memory_space<vmem>>, vector<1x256xf32>
    tpu.vector_store %arg5[%c4, %c0_25], %23 {strides = array<i32>} : memref<18x256xf32, #tpu.memory_space<vmem>>, vector<1x256xf32>,
    %25 = arith.mulf %23, %23 : vector<1x256xf32>
    %c13 = arith.constant 13 : index
    %c0_26 = arith.constant 0 : index
    %26 = vector.load %arg5[%c13, %c0_26] : memref<18x256xf32, #tpu.memory_space<vmem>>, vector<1x256xf32>
    tpu.vector_store %arg5[%c13, %c0_26], %25 {strides = array<i32>} : memref<18x256xf32, #tpu.memory_space<vmem>>, vector<1x256xf32>,
    %c0_27 = arith.constant 0 : index
    %c0_28 = arith.constant 0 : index
    %c18 = arith.constant 18 : index
    %27 = vector.load %arg1[%c0_27, %c0_28, %c18] : memref<1x1x384xf32, #tpu.memory_space<vmem>>, vector<1x1x256xf32>
    %28 = vector.shape_cast %27 : vector<1x1x256xf32> to vector<1x256xf32>
    %c5 = arith.constant 5 : index
    %c0_29 = arith.constant 0 : index
    %29 = vector.load %arg5[%c5, %c0_29] : memref<18x256xf32, #tpu.memory_space<vmem>>, vector<1x256xf32>
    tpu.vector_store %arg5[%c5, %c0_29], %28 {strides = array<i32>} : memref<18x256xf32, #tpu.memory_space<vmem>>, vector<1x256xf32>,
    %30 = arith.mulf %28, %28 : vector<1x256xf32>
    %c14 = arith.constant 14 : index
    %c0_30 = arith.constant 0 : index
    %31 = vector.load %arg5[%c14, %c0_30] : memref<18x256xf32, #tpu.memory_space<vmem>>, vector<1x256xf32>
    tpu.vector_store %arg5[%c14, %c0_30], %30 {strides = array<i32>} : memref<18x256xf32, #tpu.memory_space<vmem>>, vector<1x256xf32>,
    %c0_31 = arith.constant 0 : index
    %c0_32 = arith.constant 0 : index
    %c32 = arith.constant 32 : index
    %32 = vector.load %arg1[%c0_31, %c0_32, %c32] : memref<1x1x384xf32, #tpu.memory_space<vmem>>, vector<1x1x256xf32>
    %33 = vector.shape_cast %32 : vector<1x1x256xf32> to vector<1x256xf32>
    %c6 = arith.constant 6 : index
    %c0_33 = arith.constant 0 : index
    %34 = vector.load %arg5[%c6, %c0_33] : memref<18x256xf32, #tpu.memory_space<vmem>>, vector<1x256xf32>
    tpu.vector_store %arg5[%c6, %c0_33], %33 {strides = array<i32>} : memref<18x256xf32, #tpu.memory_space<vmem>>, vector<1x256xf32>,
    %35 = arith.mulf %33, %33 : vector<1x256xf32>
    %c15 = arith.constant 15 : index
    %c0_34 = arith.constant 0 : index
    %36 = vector.load %arg5[%c15, %c0_34] : memref<18x256xf32, #tpu.memory_space<vmem>>, vector<1x256xf32>
    tpu.vector_store %arg5[%c15, %c0_34], %35 {strides = array<i32>} : memref<18x256xf32, #tpu.memory_space<vmem>>, vector<1x256xf32>,
    %c0_35 = arith.constant 0 : index
    %c0_36 = arith.constant 0 : index
    %c33 = arith.constant 33 : index
    %37 = vector.load %arg1[%c0_35, %c0_36, %c33] : memref<1x1x384xf32, #tpu.memory_space<vmem>>, vector<1x1x256xf32>
    %38 = vector.shape_cast %37 : vector<1x1x256xf32> to vector<1x256xf32>
    %c7 = arith.constant 7 : index
    %c0_37 = arith.constant 0 : index
    %39 = vector.load %arg5[%c7, %c0_37] : memref<18x256xf32, #tpu.memory_space<vmem>>, vector<1x256xf32>
    tpu.vector_store %arg5[%c7, %c0_37], %38 {strides = array<i32>} : memref<18x256xf32, #tpu.memory_space<vmem>>, vector<1x256xf32>,
    %40 = arith.mulf %38, %38 : vector<1x256xf32>
    %c16_38 = arith.constant 16 : index
    %c0_39 = arith.constant 0 : index
    %41 = vector.load %arg5[%c16_38, %c0_39] : memref<18x256xf32, #tpu.memory_space<vmem>>, vector<1x256xf32>
    tpu.vector_store %arg5[%c16_38, %c0_39], %40 {strides = array<i32>} : memref<18x256xf32, #tpu.memory_space<vmem>>, vector<1x256xf32>,
    %c0_40 = arith.constant 0 : index
    %c0_41 = arith.constant 0 : index
    %c34 = arith.constant 34 : index
    %42 = vector.load %arg1[%c0_40, %c0_41, %c34] : memref<1x1x384xf32, #tpu.memory_space<vmem>>, vector<1x1x256xf32>
    %43 = vector.shape_cast %42 : vector<1x1x256xf32> to vector<1x256xf32>
    %c8 = arith.constant 8 : index
    %c0_42 = arith.constant 0 : index
    %44 = vector.load %arg5[%c8, %c0_42] : memref<18x256xf32, #tpu.memory_space<vmem>>, vector<1x256xf32>
    tpu.vector_store %arg5[%c8, %c0_42], %43 {strides = array<i32>} : memref<18x256xf32, #tpu.memory_space<vmem>>, vector<1x256xf32>,
    %45 = arith.mulf %43, %43 : vector<1x256xf32>
    %c17_43 = arith.constant 17 : index
    %c0_44 = arith.constant 0 : index
    %46 = vector.load %arg5[%c17_43, %c0_44] : memref<18x256xf32, #tpu.memory_space<vmem>>, vector<1x256xf32>
    tpu.vector_store %arg5[%c17_43, %c0_44], %45 {strides = array<i32>} : memref<18x256xf32, #tpu.memory_space<vmem>>, vector<1x256xf32>,
    %c0_45 = arith.constant 0 : index
    %c0_46 = arith.constant 0 : index
    %47 = vector.load %arg5[%c0_45, %c0_46] : memref<18x256xf32, #tpu.memory_space<vmem>>, vector<18x256xf32>
    %cst = arith.constant dense<0.000000e+00> : vector<48x256xf32>
    %48 = tpu.matmul %0, %47, %cst {dimension_numbers = #tpu.dot_dimension_numbers<[1], [0], [0], [1], [0, 0, 1, 1], [], []>} : vector<48x18xf32>, vector<18x256xf32>, vector<48x256xf32> -> vector<48x256xf32>
    %49 = vector.broadcast %1 : vector<48x1xf32> to vector<48x256xf32>
    %50 = arith.addf %48, %49 : vector<48x256xf32>
    %51 = vector.extract_strided_slice %50 {offsets = [0, 0], sizes = [16, 256], strides = [1, 1]} : vector<48x256xf32> to vector<16x256xf32>
    %52 = vector.extract_strided_slice %50 {offsets = [16, 0], sizes = [16, 256], strides = [1, 1]} : vector<48x256xf32> to vector<16x256xf32>
    %53 = vector.extract_strided_slice %50 {offsets = [32, 0], sizes = [16, 256], strides = [1, 1]} : vector<48x256xf32> to vector<16x256xf32>
    %54 = arith.mulf %51, %52 : vector<16x256xf32>
    %55 = arith.addf %54, %53 : vector<16x256xf32>
    %cst_47 = arith.constant 0.000000e+00 : f32
    %56 = vector.broadcast %cst_47 : f32 to vector<16x256xf32>
    %57 = arith.maximumf %55, %56 : vector<16x256xf32>
    %c0_48 = arith.constant 0 : index
    %c0_49 = arith.constant 0 : index
    %c0_50 = arith.constant 0 : index
    %58 = vector.load %arg4[%c0_48, %c0_49, %c0_50] : memref<1x16x256xf32, #tpu.memory_space<vmem>>, vector<1x16x256xf32>
    %59 = vector.shape_cast %58 : vector<1x16x256xf32> to vector<16x256xf32>
    %60 = vector.shape_cast %57 : vector<16x256xf32> to vector<1x16x256xf32>
    tpu.vector_store %arg4[%c0_48, %c0_49, %c0_50], %60 {strides = array<i32>} : memref<1x16x256xf32, #tpu.memory_space<vmem>>, vector<1x16x256xf32>,
    return
  }
  func.func @transform_0(%arg0: i32) -> (i32, i32, i32) {
    %c0_i32 = arith.constant 0 : i32
    %c0_i32_0 = arith.constant 0 : i32
    %c0_i32_1 = arith.constant 0 : i32
    return %arg0, %c0_i32, %c0_i32_0 : i32, i32, i32
  }
  func.func @transform_1(%arg0: i32) -> (i32, i32) {
    %c0_i32 = arith.constant 0 : i32
    %c0_i32_0 = arith.constant 0 : i32
    %c0_i32_1 = arith.constant 0 : i32
    return %c0_i32, %c0_i32_0 : i32, i32
  }
  func.func @transform_2(%arg0: i32) -> (i32, i32) {
    %c0_i32 = arith.constant 0 : i32
    %c0_i32_0 = arith.constant 0 : i32
    %c0_i32_1 = arith.constant 0 : i32
    return %c0_i32, %c0_i32_0 : i32, i32
  }
  func.func @transform_3(%arg0: i32) -> (i32, i32, i32) {
    %c0_i32 = arith.constant 0 : i32
    %c0_i32_0 = arith.constant 0 : i32
    %c0_i32_1 = arith.constant 0 : i32
    return %arg0, %c0_i32, %c0_i32_0 : i32, i32, i32
  }
}

</mosaic_0001>

<bundles_post_ra>
// kernel: quad_conv_forward.1
= control target key start
LH: loop header
LB: loop body
LE: loop exit
PB: predicated region body
PF: predicated region fallthrough
CT: control target
= control target key end

     0   :  { %s678_s12 = smov 0   ;;  %s800_s0 = inlined_call_operand.vmem [shape: f32[2,1,384], index: 0, kind: input, shape index: {}]   ;;  %s801_s1 = inlined_call_operand.vmem [shape: f32[48,18], index: 1, kind: input, shape index: {}]   ;;  %s802_s2 = inlined_call_operand.vmem [shape: f32[48,1], index: 2, kind: input, shape index: {}]   ;;  %s803_s3 = inlined_call_operand.vmem [shape: f32[2,16,256], index: 3, kind: output, shape index: {}]  }
   0x1 LB: > { %s593_s13 = sadd.s32 4294967295, %s646_s12   ;;  %p597_p0 = scmp.ge.s32.totalorder %s646_s12, 1  ;;  %s646_s12 = sphi %s678_s12, %s13_s12  }
   0x2   : > { %p136_p1 = scmp.lt.s32.totalorder %s646_s12, 3 }
   0x4   : > { %p137_p2 = pnand %p597_p0, %p136_p1 }
   0x5   : > { %p159_p3 = scmp.lt.s32.totalorder (!%p137_p2), %s593_s13, 1  ;;  %s648_s18 = smov (!%p137_p2), 126   ;;  %v181_v7 = vlaneseq (!%p137_p2)  ;;  %v656_v20 = vmov (!%p137_p2), 0.0   ;;  %v175_v21 = vld [vmem:[%s802_s2 + $0x8] sm:$0xff] (!%p137_p2)  ;;  %v174_v22 = vld [vmem:[%s802_s2] sm:$0xff] (!%p137_p2)  ;;  %v657_v23 = vmov (!%p137_p2), 0  }
   0x6   : > { %140 = sbr.rel (%p137_p2) target bundleno = 407 (0x197), region = 32  ;;  %s649_s19 = smov (!%p137_p2), 127   ;;  %485 = vmatprep.mubr.f32.mxu0 (!%p137_p2), %v656_v20  ;;  %503 = vmatprep.mubr.f32.mxu1 (!%p137_p2), %v656_v20  ;;  %v176_v24 = vld [vmem:[%s802_s2 + $0x10] sm:$0xff] (!%p137_p2)  ;;  %v177_v25 = vld [vmem:[%s802_s2 + $0x18] sm:$0xff] (!%p137_p2)  ;;  %v178_v26 = vld [vmem:[%s802_s2 + $0x20] sm:$0xff] (!%p137_p2)  ;;  %vm217_vm1 = vcmask (!%p137_p2), 1031168  }
   0x7   : > { %s650_s20 = smov (!%p137_p2), 112   ;;  %vm699_vm0 = vcmp.lt.s32.totalorder (!%p137_p2), %v181_v7, 256  ;;  %s651_s21 = smov (!%p137_p2), 111   ;;  %639 = vset.pattern.permute.xlu1 (!%p137_p2), %v657_v23  ;;  %638 = vset.pattern.permute.xlu0 (!%p137_p2), %v657_v23  ;;  %v179_v27 = vld [vmem:[%s802_s2 + $0x28] sm:$0xff] (!%p137_p2)  ;;  %vm196_vm2 = vcmask (!%p137_p2), 1039360   ;;  %vm238_vm3 = vcmask (!%p137_p2), 916480  }
   0x8   : > { %s652_s22 = smov (!%p137_p2), 110   ;;  %s653_s23 = smov (!%p137_p2), 96   ;;  %vm259_vm4 = vcmask (!%p137_p2), 908288   ;;  %vm280_vm5 = vcmask (!%p137_p2), 900096   ;;  %vm301_vm6 = vcmask (!%p137_p2), 785408   ;;  %vm343_vm7 = vcmask (!%p137_p2), 769024  }
   0x9   : > { %s654_s24 = smov (!%p137_p2), 94   ;;  %s655_s25 = smov (!%p137_p2), 95   ;;  %vm322_vm8 = vcmask (!%p137_p2), 777216   ;;  %vm414_vm9 = vcmask (!%p137_p2), 1041408   ;;  %vm395_vm10 = vcmask (!%p137_p2), 146432   ;;  %v171_v10 = vld [vmem:[%s801_s1 + $0x18] sm:$0xff] (!%p137_p2) }
   0xa   : > { %v169_v23 = vld [vmem:[%s801_s1 + $0x8] sm:$0xff] (!%p137_p2) }
   0xd   : > { %s807_s13 = smov (!%p159_p3, %s593_s13), 1 }
   0xe   : > { %s619_s14 = smul.u32 3, %s807_s13 }
  0x10   : > { %s692_s17 = scalar_lea.vmem %s800_s0, %s619_s14 }
  0x11   : > { %v212_v0 = vld [vmem:[%s692_s17] sm:$0x7] }
  0x12   : > { %v191_v1 = vld [vmem:[%s692_s17] sm:$0x7]  ;;  %214 = vrot.lane.b32.xlu1 %v212_v0, %s648_s18  ;;  %v223_v2 = vmul.f32 %v212_v0, %v212_v0 }
  0x13   : > { %193 = vrot.lane.b32.xlu0 %v191_v1, %s649_s19  ;;  %v233_v3 = vld [vmem:[%s692_s17] sm:$0x7]  ;;  %v202_v4 = vmul.f32 %v191_v1, %v191_v1 }
  0x14   : > { %v244_v5 = vmul.f32 %v233_v3, %v233_v3  ;;  %v254_v6 = vld [vmem:[%s692_s17] sm:$0x7] }
  0x15   : > { %v265_v8 = vmul.f32 %v254_v6, %v254_v6  ;;  %v275_v9 = vld [vmem:[%s692_s17] sm:$0x7] }
  0x16   : > { %225 = vrot.lane.b32.xlu1 %v223_v2, %s648_s18  ;;  %v180_v11 = vld [vmem:[%s692_s17] sm:$0x3]  ;;  %v286_v12 = vmul.f32 %v275_v9, %v275_v9 }
  0x17   : > { %235 = vrot.lane.b32.xlu0 %v233_v3, %s650_s20  ;;  %185 = vst.msk [vmem:[#allocation2] ss:$8 sm:$0x3] %vm699_vm0, %v180_v11  ;;  %v187_v13 = vmul.f32 %v180_v11, %v180_v11  ;;  %v296_v14 = vld [vmem:[%s692_s17] sm:$0x7] }
  0x18   : > { %v307_v15 = vmul.f32 %v296_v14, %v296_v14  ;;  %v338_v16 = vld [vmem:[%s692_s17] sm:$0x7] }
  0x19   : > { %189 = vst.msk [vmem:[#allocation2 + $0x11] ss:$8 sm:$0x3] %vm699_vm0, %v187_v13  ;;  %v317_v17 = vld [vmem:[%s692_s17] sm:$0x7]  ;;  %v349_v18 = vmul.f32 %v338_v16, %v338_v16 }
  0x1a   : > { %246 = vrot.lane.b32.xlu1 %v244_v5, %s650_s20  ;;  %v328_v19 = vmul.f32 %v317_v17, %v317_v17 }
  0x1b   : > { %204 = vrot.lane.b32.xlu0 %v202_v4, %s649_s19 }
  0x1e   : > { %267 = vrot.lane.b32.xlu1 %v265_v8, %s651_s21 }
  0x1f   : > { %256 = vrot.lane.b32.xlu0 %v254_v6, %s651_s21 }
  0x22   : > { %288 = vrot.lane.b32.xlu1 %v286_v12, %s652_s22 }
  0x23   : > { %277 = vrot.lane.b32.xlu0 %v275_v9, %s652_s22 }
  0x26   : > { %309 = vrot.lane.b32.xlu1 %v307_v15, %s653_s23 }
  0x27   : > { %298 = vrot.lane.b32.xlu0 %v296_v14, %s653_s23 }
  0x2a   : > { %340 = vrot.lane.b32.xlu1 %v338_v16, %s654_s24 }
  0x2b   : > { %319 = vrot.lane.b32.xlu0 %v317_v17, %s655_s25 }
  0x2e   : > { %351 = vrot.lane.b32.xlu1 %v349_v18, %s654_s24 }
  0x2f   : > { %330 = vrot.lane.b32.xlu0 %v328_v19, %s655_s25  ;;  %s610_s25 = sshll.u32 %s807_s13, 5 }
  0x30   : > { %s167_s28 = scalar_lea.vmem %s803_s3, %s610_s25 }
  0x32   : > { %372 = vperm.xlu1 %639, %v175_v21   ;;  %v168_v21 = vld [vmem:[%s801_s1] sm:$0xff] }
  0x33   : > { %367 = vperm.xlu0 %638, %v174_v22  }
  0x36   : > { %377 = vperm.xlu1 %639, %v176_v24   ;;  %v172_v24 = vld [vmem:[%s801_s1 + $0x20] sm:$0xff] }
  0x37   : > { %382 = vperm.xlu0 %638, %v177_v25   ;;  %v170_v25 = vld [vmem:[%s801_s1 + $0x10] sm:$0xff] }
  0x3a   : > { %387 = vperm.xlu1 %639, %v178_v26   ;;  %v173_v26 = vld [vmem:[%s801_s1 + $0x28] sm:$0xff] }
  0x3b   : > { %392 = vperm.xlu0 %638, %v179_v27  }
  0x84   : > { %v215_v28 = vpop.permute.xlu1 %214 }
  0x85   : > { %v194_v29 = vpop.permute.xlu0 %193  ;;  %v216_v30 = vrot.slane %v215_v28, 1 }
  0x86   : > { %v195_v31 = vrot.slane %v194_v29, 1 }
  0x87   : > { %v218_v32 = vsel %vm217_vm1, %v215_v28, %v216_v30 }
  0x88   : > { %v197_v33 = vsel %vm196_vm2, %v194_v29, %v195_v31  ;;  %221 = vst.msk [vmem:[#allocation2 + $0x2] ss:$8 sm:$0x3] %vm699_vm0, %v218_v32  ;;  %v226_v34 = vpop.permute.xlu1 %225 }
  0x89   : > { %200 = vst.msk [vmem:[#allocation2 + $0x1] ss:$8 sm:$0x3] %vm699_vm0, %v197_v33  ;;  %v236_v35 = vpop.permute.xlu0 %235  ;;  %v227_v36 = vrot.slane %v226_v34, 1 }
  0x8a   : > { %v237_v37 = vrot.slane %v236_v35, 1 }
  0x8b   : > { %v228_v38 = vsel %vm217_vm1, %v226_v34, %v227_v36 }
  0x8c   : > { %v239_v39 = vsel %vm238_vm3, %v236_v35, %v237_v37  ;;  %231 = vst.msk [vmem:[#allocation2 + $0x13] ss:$8 sm:$0x3] %vm699_vm0, %v228_v38  ;;  %v247_v40 = vpop.permute.xlu1 %246 }
  0x8d   : > { %242 = vst.msk [vmem:[#allocation2 + $0x3] ss:$8 sm:$0x3] %vm699_vm0, %v239_v39  ;;  %v205_v41 = vpop.permute.xlu0 %204  ;;  %v248_v42 = vrot.slane %v247_v40, 1 }
  0x8e   : > { %v206_v43 = vrot.slane %v205_v41, 1 }
  0x8f   : > { %v249_v44 = vsel %vm238_vm3, %v247_v40, %v248_v42 }
  0x90   : > { %v207_v45 = vsel %vm196_vm2, %v205_v41, %v206_v43  ;;  %252 = vst.msk [vmem:[#allocation2 + $0x14] ss:$8 sm:$0x3] %vm699_vm0, %v249_v44  ;;  %v268_v46 = vpop.permute.xlu1 %267 }
  0x91   : > { %210 = vst.msk [vmem:[#allocation2 + $0x12] ss:$8 sm:$0x3] %vm699_vm0, %v207_v45  ;;  %v257_v47 = vpop.permute.xlu0 %256  ;;  %v269_v48 = vrot.slane %v268_v46, 1 }
  0x92   : > { %v258_v49 = vrot.slane %v257_v47, 1 }
  0x93   : > { %v270_v50 = vsel %vm259_vm4, %v268_v46, %v269_v48 }
  0x94   : > { %v260_v51 = vsel %vm259_vm4, %v257_v47, %v258_v49  ;;  %273 = vst.msk [vmem:[#allocation2 + $0x15] ss:$8 sm:$0x3] %vm699_vm0, %v270_v50  ;;  %v289_v52 = vpop.permute.xlu1 %288 }
  0x95   : > { %263 = vst.msk [vmem:[#allocation2 + $0x4] ss:$8 sm:$0x3] %vm699_vm0, %v260_v51  ;;  %v278_v53 = vpop.permute.xlu0 %277  ;;  %v290_v54 = vrot.slane %v289_v52, 1 }
  0x96   : > { %v279_v55 = vrot.slane %v278_v53, 1 }
  0x97   : > { %v291_v56 = vsel %vm280_vm5, %v289_v52, %v290_v54 }
  0x98   : > { %v281_v57 = vsel %vm280_vm5, %v278_v53, %v279_v55  ;;  %294 = vst.msk [vmem:[#allocation2 + $0x16] ss:$8 sm:$0x3] %vm699_vm0, %v291_v56  ;;  %v310_v58 = vpop.permute.xlu1 %309 }
  0x99   : > { %284 = vst.msk [vmem:[#allocation2 + $0x5] ss:$8 sm:$0x3] %vm699_vm0, %v281_v57  ;;  %v299_v59 = vpop.permute.xlu0 %298  ;;  %v311_v60 = vrot.slane %v310_v58, 1 }
  0x9a   : > { %v300_v61 = vrot.slane %v299_v59, 1 }
  0x9b   : > { %v312_v62 = vsel %vm301_vm6, %v310_v58, %v311_v60 }
  0x9c   : > { %v302_v63 = vsel %vm301_vm6, %v299_v59, %v300_v61  ;;  %315 = vst.msk [vmem:[#allocation2 + $0x17] ss:$8 sm:$0x3] %vm699_vm0, %v312_v62  ;;  %v341_v0 = vpop.permute.xlu1 %340 }
  0x9d   : > { %305 = vst.msk [vmem:[#allocation2 + $0x6] ss:$8 sm:$0x3] %vm699_vm0, %v302_v63  ;;  %v320_v1 = vpop.permute.xlu0 %319  ;;  %v342_v2 = vrot.slane %v341_v0, 1 }
  0x9e   : > { %v321_v3 = vrot.slane %v320_v1, 1 }
  0x9f   : > { %v344_v4 = vsel %vm343_vm7, %v341_v0, %v342_v2 }
  0xa0   : > { %v323_v5 = vsel %vm322_vm8, %v320_v1, %v321_v3  ;;  %347 = vst.msk [vmem:[#allocation2 + $0x10] ss:$8 sm:$0x3] %vm699_vm0, %v344_v4  ;;  %v352_v6 = vpop.permute.xlu1 %351 }
  0xa1   : > { %326 = vst.msk [vmem:[#allocation2 + $0x7] ss:$8 sm:$0x3] %vm699_vm0, %v323_v5  ;;  %v331_v7 = vpop.permute.xlu0 %330  ;;  %v353_v8 = vrot.slane %v352_v6, 1 }
  0xa2   : > { %v332_v9 = vrot.slane %v331_v7, 1 }
  0xa3   : > { %v354_v11 = vsel %vm343_vm7, %v352_v6, %v353_v8 }
  0xa4   : > { %v333_v12 = vsel %vm322_vm8, %v331_v7, %v332_v9  ;;  %357 = vst.msk [vmem:[#allocation2 + $0x21] ss:$8 sm:$0x3] %vm699_vm0, %v354_v11 }
  0xa5   : > { %336 = vst.msk [vmem:[#allocation2 + $0x20] ss:$8 sm:$0x3] %vm699_vm0, %v333_v12 }
  0xa7   : > { %v362_v14 = vld [vmem:[#allocation2 + $0x18] sm:$0xff]  ;;  %v361_v17 = vld [vmem:[#allocation2 + $0x10] sm:$0xff] }
  0xa8   : > { %v360_v13 = vld [vmem:[#allocation2 + $0x8] sm:$0xff]  ;;  %v359_v15 = vld [vmem:[#allocation2] sm:$0xff] }
  0xa9   : > { %v611_v16 = vpack.c.bf16 %v362_v14, %v360_v13  ;;  %v613_v18 = vpack.c.bf16 %v361_v17, %v359_v15 }
  0xab   : > { %612 = vmatprep.subr.bf16.mxu0 %v611_v16  ;;  %615 = vmatprep.subr.bf16.mxu1 %v611_v16 }
  0xac   : > { %614 = vmatpush1.bf16.msra.mxu0 %v613_v18  ;;  %617 = vmatpush1.bf16.msra.mxu1 %v613_v18  ;;  %v364_v19 = vld [vmem:[#allocation2 + $0x28] sm:$0x3]  ;;  %v363_v22 = vld [vmem:[#allocation2 + $0x20] sm:$0x3] }
  0xad   : > { %600 = vmatprep.subr.msk.mxu0 %vm414_vm9, %v364_v19  ;;  %616 = vmatprep.subr.msk.mxu1 %vm414_vm9, %v364_v19 }
  0xb0   : > { %601 = vmatpush1.msk.msra.mxu0 %vm414_vm9, %v363_v22  ;;  %618 = vmatpush1.msk.msra.mxu1 %vm414_vm9, %v363_v22 }
  0xb1   : > { %602 = vmatmul.mubr.msk.f32.vlgmr.msra.gmra.mrb[0].mxu0 %vm395_vm10, %v168_v21  ;;  %605 = vmatmul.mubr.msk.f32.vlgmr.msra.gmra.mrb[0].mxu1 %vm395_vm10, %v171_v10  ;;  %v373_v27 = vpop.permute.xlu1 %372 }
  0xb2   : > { %491 = vmatprep.mubr.f32.mxu0 %v656_v20  ;;  %509 = vmatprep.mubr.f32.mxu1 %v656_v20  ;;  %v368_v28 = vpop.permute.xlu0 %367 }
  0xb5   : > { %603 = vmatmul.mubr.msk.f32.gmra.mrb[2].mxu0 %vm395_vm10, %v169_v23  ;;  %606 = vmatmul.mubr.msk.f32.gmra.mrb[2].mxu1 %vm395_vm10, %v172_v24  ;;  %v378_v29 = vpop.permute.xlu1 %377 }
  0xb6   : > { %497 = vmatprep.mubr.f32.mxu0 %v656_v20  ;;  %515 = vmatprep.mubr.f32.mxu1 %v656_v20  ;;  %v383_v30 = vpop.permute.xlu0 %382 }
  0xb9   : > { %604 = vmatmul.mubr.msk.f32.gmra.mrb[4].mxu0 %vm395_vm10, %v170_v25  ;;  %607 = vmatmul.mubr.msk.f32.gmra.mrb[4].mxu1 %vm395_vm10, %v173_v26  ;;  %v388_v42 = vpop.permute.xlu1 %387 }
  0xba   : > { %v393_v43 = vpop.permute.xlu0 %392 }
 0x184   : > { %v487_v31 = vpop.f32.mrb[0].mxu0  ;;  %v505_v32 = vpop.f32.mrb[0].mxu1 }
 0x185   : > { %v489_v33 = vpop.f32.mrb[1].mxu0  ;;  %v507_v20 = vpop.f32.mrb[1].mxu1  ;;  %v506_v36 = vadd.f32 %v505_v32, %v383_v30  ;;  %v488_v48 = vadd.f32 %v487_v31, %v368_v28 }
 0x186   : > { %v508_v40 = vadd.f32 %v507_v20, %v383_v30  ;;  %v490_v53 = vadd.f32 %v489_v33, %v368_v28 }
 0x188   : > { %v493_v34 = vpop.f32.mrb[2].mxu0  ;;  %v511_v35 = vpop.f32.mrb[2].mxu1 }
 0x189   : > { %v494_v37 = vadd.f32 %v493_v34, %v373_v27  ;;  %v495_v38 = vpop.f32.mrb[3].mxu0  ;;  %v513_v39 = vpop.f32.mrb[3].mxu1  ;;  %v512_v56 = vadd.f32 %v511_v35, %v388_v42 }
 0x18a   : > { %v496_v41 = vadd.f32 %v495_v38, %v373_v27  ;;  %v514_v59 = vadd.f32 %v513_v39, %v388_v42 }
 0x18b   : > { %v524_v44 = vmul.f32 %v506_v36, %v494_v37 }
 0x18c   : > { %v525_v45 = vmul.f32 %v508_v40, %v496_v41  ;;  %v499_v46 = vpop.f32.mrb[4].mxu0  ;;  %v517_v47 = vpop.f32.mrb[4].mxu1 }
 0x18d   : > { %v500_v49 = vadd.f32 %v499_v46, %v378_v29  ;;  %v518_v50 = vadd.f32 %v517_v47, %v393_v43  ;;  %v501_v51 = vpop.f32.mrb[5].mxu0  ;;  %v519_v52 = vpop.f32.mrb[5].mxu1 }
 0x18e   : > { %v502_v54 = vadd.f32 %v501_v51, %v378_v29  ;;  %v520_v55 = vadd.f32 %v519_v52, %v393_v43 }
 0x18f   : > { %v522_v57 = vmul.f32 %v500_v49, %v488_v48  ;;  %v528_v58 = vadd.f32 %v524_v44, %v518_v50 }
 0x190   : > { %v523_v60 = vmul.f32 %v502_v54, %v490_v53  ;;  %v529_v61 = vadd.f32 %v525_v45, %v520_v55 }
 0x191   : > { %v526_v62 = vadd.f32 %v522_v57, %v512_v56  ;;  %v532_v63 = vmax.f32 %v528_v58, 0.0 }
 0x192   : > { %v527_v0 = vadd.f32 %v523_v60, %v514_v59  ;;  %v533_v1 = vmax.f32 %v529_v61, 0.0 }
 0x193   : > { %v530_v2 = vmax.f32 %v526_v62, 0.0  ;;  %536 = vst [vmem:[%s167_s28 + $0x10] sm:$0xff] %v532_v63 }
 0x194   : > { %v531_v3 = vmax.f32 %v527_v0, 0.0  ;;  %537 = vst [vmem:[%s167_s28 + $0x18] sm:$0xff] %v533_v1 }
 0x195   : > { %534 = vst [vmem:[%s167_s28] sm:$0xff] %v530_v2 }
 0x196   : > { %535 = vst [vmem:[%s167_s28 + $0x8] sm:$0xff] %v531_v3 }
 0x197 PF: > { %s13_s12 = sadd.s32 1, %s646_s12  }
 0x198   : > { %p10_p4 = scmp.ge.s32.totalorder %s13_s12, 4  }
 0x19a   :  { %12 = sbr.rel (!%p10_p4) target bundleno = 1 (0x1), region = 79 }

</bundles_post_ra>
